<compile_context>
chip_gen: v7x
topology: tpu7x:2x2x1
jax: 0.10.0
libtpu: 0.0.40
codegen_flags: <defaults>
</compile_context>

<pallas_src>
import functools

import jax
import jax.numpy as jnp
from jax.experimental import pallas as pl
from jax.experimental.pallas import tpu as pltpu

# LIFNode hyperparameters (module __init__ defaults)
TAU = 100.0
V_THRESHOLD = 1.0
V_RESET = 0.0
_LEAK = 1.0 - 1.0 / TAU      # v2 - (v2 - V_RESET)/TAU == v2 * _LEAK  (valid since V_RESET == 0.0)

_LANES = 128
_ROW_BYTES = _LANES * 4      # f32 row
_N_STREAMS = 6               # 3 inputs + 3 outputs, all f32
_MAX_BLOCK_ROWS = 4096       # 2 MiB/array/block; 6 streams x 2 buffers = 24 MiB double-buffered


def _lif_kernel(dv_ref, v_ref, vacc_ref, spike_ref, vnew_ref, vaccnew_ref):
    v1 = v_ref[...] + dv_ref[...]            # self.v += dv
    fired = v1 > V_THRESHOLD                 # (v - v_threshold) > 0
    spike = fired.astype(v1.dtype)           # surrogate relu forward: (x > 0).float()
    v2 = jnp.where(fired, V_RESET, v1)       # masked_fill_(spike > 0, v_reset)
    v3 = v2 * _LEAK                          # self.v = self.v - (self.v - v_reset)/tau

    spike_ref[...] = spike
    vnew_ref[...] = v3
    vaccnew_ref[...] = vacc_ref[...] + spike  # self.v_acc += spike


def _vmem_capacity_bytes() -> int:
    """Generation-aware VMEM capacity; conservative fallback = 64 MiB (v7x)."""
    try:
        cap = getattr(pltpu.get_tpu_info(), "vmem_capacity_bytes", None)
        if cap:
            return int(cap)
    except Exception:
        pass
    return 64 << 20


def _choose_block_rows(rows: int, vmem_capacity: int) -> int:
    """Largest block that fits the double-buffered VMEM budget, with >=2 grid steps."""
    budget = int(vmem_capacity * 0.6)                      # leave headroom for scratch/compiler
    fit = budget // (_N_STREAMS * 2 * _ROW_BYTES)
    max_rows = max(8, min(_MAX_BLOCK_ROWS, (fit // 8) * 8))
    if rows <= 8:
        return rows                                        # block == full array dim (allowed)
    # Split into at least 2 blocks so the "parallel" axis shards across v7x's 2 TCs.
    half = ((((rows + 1) // 2) + 7) // 8) * 8
    return max(8, min(max_rows, half))


@functools.partial(jax.jit, donate_argnums=(1, 2))
def lif_forward(dv, v_prev, v_acc_prev):
    """Run one LIFNode.forward step.

    dv, v_prev, v_acc_prev: same shape (NCHW or anything), float32.
    v_prev / v_acc_prev are DONATED (updated in place via input_output_aliases).
    Returns (spike, v_new, v_acc_new, v_acc_l), all same shape as dv.
    """
    orig_shape = dv.shape
    n = dv.size
    pad = (-n) % _LANES                      # only lane alignment is required
    n_pad = n + pad
    rows = n_pad // _LANES

    def prep(x):
        x = x.reshape(-1).astype(jnp.float32)
        if pad:  # only copy/pad when the element count is not lane-aligned
            x = jnp.concatenate([x, jnp.zeros((pad,), jnp.float32)])
        return x.reshape(rows, _LANES)

    dv2, vprev2, vacc2 = prep(dv), prep(v_prev), prep(v_acc_prev)

    vmem_capacity = _vmem_capacity_bytes()
    block_rows = _choose_block_rows(rows, vmem_capacity)
    grid = (pl.cdiv(rows, block_rows),)

    block_bytes = _N_STREAMS * 2 * block_rows * _ROW_BYTES
    vmem_limit = min(max(vmem_capacity - (8 << 20), 16 << 20),
                     max(32 << 20, block_bytes + (8 << 20)))

    blk = pl.BlockSpec((block_rows, _LANES), lambda i: (i, 0))
    out_sds = jax.ShapeDtypeStruct((rows, _LANES), jnp.float32)

    spike, v_new, v_acc_new = pl.pallas_call(
        _lif_kernel,
        out_shape=(out_sds, out_sds, out_sds),
        grid=grid,
        in_specs=[blk, blk, blk],
        out_specs=[blk, blk, blk],
        # State is updated in place in the reference module: alias v_prev -> v_new
        # and v_acc_prev -> v_acc_new (real in-place thanks to donate_argnums).
        input_output_aliases={1: 1, 2: 2},
        compiler_params=pltpu.CompilerParams(
            dimension_semantics=("parallel",),
            vmem_limit_bytes=vmem_limit,
        ),
    )(dv2, vprev2, vacc2)

    def unprep(x):
        if pad:
            return x.reshape(-1)[:n].reshape(orig_shape)
        return x.reshape(orig_shape)

    spike_o = unprep(spike)
    v_new_o = unprep(v_new)
    v_acc_new_o = unprep(v_acc_new)
    # v_acc_l is an exact elementwise recombination of two kernel outputs; computing it
    # here (fused by XLA) keeps the kernel at 6 HBM streams instead of 7.
    v_acc_l_o = v_new_o + spike_o
    return spike_o, v_new_o, v_acc_new_o, v_acc_l_o


def lif_forward_ref(dv, v_prev, v_acc_prev):
    """Pure-JAX reference of the same forward step (for sanity check)."""
    v1 = v_prev + dv
    fired = (v1 - V_THRESHOLD) > 0.0
    spike = fired.astype(dv.dtype)
    v2 = jnp.where(fired, V_RESET, v1)
    leak = (v2 - V_RESET) / TAU
    return spike, v2 - leak, v_acc_prev + spike, v2 - leak + spike


if __name__ == "__main__":
    key = jax.random.PRNGKey(0)
    # NCHW conv-feature-like input: batch=2, channels=4, spatial=16x16
    x = jax.random.normal(key, (2, 4, 16, 16), dtype=jnp.float32) * 2.0

    # Fresh node state: v = v_reset = 0, v_acc = 0
    v0 = jnp.zeros_like(x)
    vacc0 = jnp.zeros_like(x)

    # Reference FIRST: v0/vacc0 are donated (consumed) by the kernel call below.
    rs, rv, ra, rl = lif_forward_ref(x, v0, vacc0)

    spike, v_new, v_acc_new, v_acc_l = lif_forward(x, v0, vacc0)
    jax.block_until_ready((spike, v_new, v_acc_new, v_acc_l))

    assert jnp.allclose(spike, rs)
    assert jnp.allclose(v_new, rv, atol=1e-6)
    assert jnp.allclose(v_acc_new, ra, atol=1e-6)
    assert jnp.allclose(v_acc_l, rl, atol=1e-6)

    print("KERNEL_OK")
</pallas_src>

<mosaic_0001>
module attributes {stable_mosaic.version = 11 : i64} {
  func.func @_lif_kernel(%arg0: i32, %arg1: memref<8x128xf32, #tpu.memory_space<vmem>>, %arg2: memref<8x128xf32, #tpu.memory_space<vmem>>, %arg3: memref<8x128xf32, #tpu.memory_space<vmem>>, %arg4: memref<8x128xf32, #tpu.memory_space<vmem>>, %arg5: memref<8x128xf32, #tpu.memory_space<vmem>>, %arg6: memref<8x128xf32, #tpu.memory_space<vmem>>) attributes {dimension_semantics = [#tpu.dimension_semantics<parallel>], iteration_bounds = array<i64: 2>, scalar_prefetch = 0 : i64, scratch_operands = 0 : i64, tpu.core_type = #tpu.core_type<tc>, window_params = [{transform_indices = @transform_0, window_bounds = array<i64: 8, 128>}, {transform_indices = @transform_1, window_bounds = array<i64: 8, 128>}, {transform_indices = @transform_2, window_bounds = array<i64: 8, 128>}, {transform_indices = @transform_3, window_bounds = array<i64: 8, 128>}, {transform_indices = @transform_4, window_bounds = array<i64: 8, 128>}, {transform_indices = @transform_5, window_bounds = array<i64: 8, 128>}]} {
    %c0 = arith.constant 0 : index
    %c0_0 = arith.constant 0 : index
    %0 = vector.load %arg2[%c0, %c0_0] : memref<8x128xf32, #tpu.memory_space<vmem>>, vector<8x128xf32>
    %c0_1 = arith.constant 0 : index
    %c0_2 = arith.constant 0 : index
    %1 = vector.load %arg1[%c0_1, %c0_2] : memref<8x128xf32, #tpu.memory_space<vmem>>, vector<8x128xf32>
    %2 = arith.addf %0, %1 : vector<8x128xf32>
    %cst = arith.constant 1.000000e+00 : f32
    %3 = vector.broadcast %cst : f32 to vector<8x128xf32>
    %4 = arith.cmpf ogt, %2, %3 : vector<8x128xf32>
    %5 = arith.extui %4 : vector<8x128xi1> to vector<8x128xi32>
    %6 = arith.sitofp %5 : vector<8x128xi32> to vector<8x128xf32>
    %cst_3 = arith.constant 0.000000e+00 : f32
    %7 = vector.broadcast %cst_3 : f32 to vector<8x128xf32>
    %8 = arith.select %4, %7, %2 : vector<8x128xi1>, vector<8x128xf32>
    %cst_4 = arith.constant 9.900000e-01 : f32
    %9 = vector.broadcast %cst_4 : f32 to vector<8x128xf32>
    %10 = arith.mulf %8, %9 : vector<8x128xf32>
    %c0_5 = arith.constant 0 : index
    %c0_6 = arith.constant 0 : index
    %11 = vector.load %arg4[%c0_5, %c0_6] : memref<8x128xf32, #tpu.memory_space<vmem>>, vector<8x128xf32>
    tpu.vector_store %arg4[%c0_5, %c0_6], %6 {strides = array<i32>} : memref<8x128xf32, #tpu.memory_space<vmem>>, vector<8x128xf32>,
    %c0_7 = arith.constant 0 : index
    %c0_8 = arith.constant 0 : index
    %12 = vector.load %arg5[%c0_7, %c0_8] : memref<8x128xf32, #tpu.memory_space<vmem>>, vector<8x128xf32>
    tpu.vector_store %arg5[%c0_7, %c0_8], %10 {strides = array<i32>} : memref<8x128xf32, #tpu.memory_space<vmem>>, vector<8x128xf32>,
    %c0_9 = arith.constant 0 : index
    %c0_10 = arith.constant 0 : index
    %13 = vector.load %arg3[%c0_9, %c0_10] : memref<8x128xf32, #tpu.memory_space<vmem>>, vector<8x128xf32>
    %14 = arith.addf %13, %6 : vector<8x128xf32>
    %c0_11 = arith.constant 0 : index
    %c0_12 = arith.constant 0 : index
    %15 = vector.load %arg6[%c0_11, %c0_12] : memref<8x128xf32, #tpu.memory_space<vmem>>, vector<8x128xf32>
    tpu.vector_store %arg6[%c0_11, %c0_12], %14 {strides = array<i32>} : memref<8x128xf32, #tpu.memory_space<vmem>>, vector<8x128xf32>,
    return
  }
  func.func @transform_0(%arg0: i32) -> (i32, i32) {
    %c0_i32 = arith.constant 0 : i32
    %c0_i32_0 = arith.constant 0 : i32
    return %arg0, %c0_i32 : i32, i32
  }
  func.func @transform_1(%arg0: i32) -> (i32, i32) {
    %c0_i32 = arith.constant 0 : i32
    %c0_i32_0 = arith.constant 0 : i32
    return %arg0, %c0_i32 : i32, i32
  }
  func.func @transform_2(%arg0: i32) -> (i32, i32) {
    %c0_i32 = arith.constant 0 : i32
    %c0_i32_0 = arith.constant 0 : i32
    return %arg0, %c0_i32 : i32, i32
  }
  func.func @transform_3(%arg0: i32) -> (i32, i32) {
    %c0_i32 = arith.constant 0 : i32
    %c0_i32_0 = arith.constant 0 : i32
    return %arg0, %c0_i32 : i32, i32
  }
  func.func @transform_4(%arg0: i32) -> (i32, i32) {
    %c0_i32 = arith.constant 0 : i32
    %c0_i32_0 = arith.constant 0 : i32
    return %arg0, %c0_i32 : i32, i32
  }
  func.func @transform_5(%arg0: i32) -> (i32, i32) {
    %c0_i32 = arith.constant 0 : i32
    %c0_i32_0 = arith.constant 0 : i32
    return %arg0, %c0_i32 : i32, i32
  }
}

</mosaic_0001>

<bundles_post_ra>
// kernel: lif_forward.1
= control target key start
LH: loop header
LB: loop body
LE: loop exit
PB: predicated region body
PF: predicated region fallthrough
CT: control target
= control target key end

     0   :  { %s489_s18 = smov 0   ;;  %s518_s0 = inlined_call_operand.vmem [shape: f32[16,128], index: 0, kind: input, shape index: {}]   ;;  %s519_s1 = inlined_call_operand.vmem [shape: f32[16,128], index: 1, kind: input, shape index: {}, may-alias: {1,4}]   ;;  %s520_s2 = inlined_call_operand.vmem [shape: f32[16,128], index: 2, kind: input, shape index: {}, may-alias: {2,5}]   ;;  %s521_s3 = inlined_call_operand.vmem [shape: f32[16,128], index: 3, kind: output, shape index: {0}]   ;;  %s522_s4 = inlined_call_operand.vmem [shape: f32[16,128], index: 4, kind: output, shape index: {1}, may-alias: {1,4}]   ;;  %s523_s5 = inlined_call_operand.vmem [shape: f32[16,128], index: 5, kind: output, shape index: {2}, may-alias: {2,5}]  }
   0x1 LB: > { %s427_s19 = sadd.s32 4294967295, %s456_s18   ;;  %p431_p0 = scmp.ge.s32.totalorder %s456_s18, 1  ;;  %s456_s18 = sphi %s489_s18, %s16_s18  }
   0x2   : > { %p209_p1 = scmp.lt.s32.totalorder %s456_s18, 3 }
   0x4   : > { %p210_p2 = pnand %p431_p0, %p209_p1 }
   0x5   : > { %p251_p3 = scmp.lt.s32.totalorder (!%p210_p2), %s427_s19, 1  ;;  %v458_v4 = vmov (!%p210_p2), 0.0  }
   0x6   : > { %213 = sbr.rel (%p210_p2) target bundleno = 25 (0x19), region = 32 }
   0xd   : > { %s525_s19 = smov (!%p251_p3, %s427_s19), 1 }
   0xe   : > { %s432_s20 = sshll.u32 %s525_s19, 3 }
   0xf   : > { %s254_s23 = scalar_lea.vmem %s518_s0, %s432_s20  ;;  %s258_s26 = scalar_lea.vmem %s519_s1, %s432_s20 }
  0x10   : > { %s262_s29 = scalar_lea.vmem %s520_s2, %s432_s20  ;;  %v275_v0 = vld [vmem:[%s258_s26] sm:$0xff]  ;;  %s266_s7 = scalar_lea.vmem %s521_s3, %s432_s20 }
  0x11   : > { %v276_v1 = vld [vmem:[%s254_s23] sm:$0xff]  ;;  %s270_s10 = scalar_lea.vmem %s522_s4, %s432_s20  ;;  %s274_s13 = scalar_lea.vmem %s523_s5, %s432_s20 }
  0x12   : > { %v277_v2 = vadd.f32 %v276_v1, %v275_v0  ;;  %v285_v3 = vld [vmem:[%s262_s29] sm:$0xff] }
  0x14   : > { %vm278_vm0 = vcmp.gt.f32.partialorder %v277_v2, 1.0 }
  0x15   : > { %v438_v5 = vsel %vm278_vm0, 1.0, %v458_v4  ;;  %v281_v6 = vsel %vm278_vm0, 0.0, %v277_v2 }
  0x16   : > { %v282_v7 = vmul.f32 0.99, %v281_v6  ;;  %283 = vst [vmem:[%s266_s7] sm:$0xff] %v438_v5  ;;  %v286_v8 = vadd.f32 %v438_v5, %v285_v3 }
  0x18   : > { %284 = vst [vmem:[%s270_s10] sm:$0xff] %v282_v7  ;;  %287 = vst [vmem:[%s274_s13] sm:$0xff] %v286_v8 }
  0x19 PF: > { %s16_s18 = sadd.s32 1, %s456_s18  }
  0x1a   : > { %p13_p4 = scmp.ge.s32.totalorder %s16_s18, 4  }
  0x1c   :  { %15 = sbr.rel (!%p13_p4) target bundleno = 1 (0x1), region = 92 }

</bundles_post_ra>
